<compile_context>
chip_gen: v6e
topology: v6e:2x2x1
jax: 0.10.0
libtpu: 0.0.40
codegen_flags: <defaults>
</compile_context>

<pallas_src>
import jax
import jax.numpy as jnp
from jax.experimental import pallas as pl
from jax.experimental.pallas import tpu as pltpu


# ----------------------------------------------------------------------------
# Primary path: zero-copy identity (output aliases the input HBM buffer).
# ----------------------------------------------------------------------------
def _identity_alias_kernel(x_hbm_ref, o_hbm_ref):
    # Output is aliased to the input buffer via input_output_aliases, so there
    # is nothing to compute and nothing to move. Empty body is intentional.
    del x_hbm_ref, o_hbm_ref


def identity(x: jax.Array) -> jax.Array:
    """Zero-copy nn.Identity: alias input -> output, no-op kernel body.

    For true zero data movement, donate `x` at the jit boundary, e.g.
    `jax.jit(identity, donate_argnums=0)`; otherwise XLA inserts one copy of
    the input to satisfy the alias (numerically identical either way).
    """
    return pl.pallas_call(
        _identity_alias_kernel,
        out_shape=jax.ShapeDtypeStruct(x.shape, x.dtype),
        in_specs=[pl.BlockSpec(memory_space=pl.ANY)],
        out_specs=pl.BlockSpec(memory_space=pl.ANY),
        input_output_aliases={0: 0},
    )(x)


# ----------------------------------------------------------------------------
# Fallback path: materialized copy via a single direct HBM->HBM DMA.
# ----------------------------------------------------------------------------
def _identity_dma_kernel(x_hbm_ref, o_hbm_ref, copy_sem):
    # One whole-array DMA, HBM -> HBM. No VMEM staging, no vld/vst slots,
    # no grid-step overhead; the DMA engine reads and writes concurrently so
    # a single descriptor already saturates HBM bandwidth for a copy.
    cp = pltpu.make_async_copy(x_hbm_ref, o_hbm_ref, copy_sem)
    cp.start()
    cp.wait()


def identity_copy(x: jax.Array) -> jax.Array:
    """Materialized-copy identity: fresh output buffer, one HBM->HBM DMA.

    Works for arbitrary shapes/dtypes — no lane padding, no wrapper-side
    reshape/pad/slice passes, so HBM traffic is exactly one read + one write
    of the tensor.
    """
    return pl.pallas_call(
        _identity_dma_kernel,
        out_shape=jax.ShapeDtypeStruct(x.shape, x.dtype),
        in_specs=[pl.BlockSpec(memory_space=pl.ANY)],
        out_specs=pl.BlockSpec(memory_space=pl.ANY),
        scratch_shapes=[pltpu.SemaphoreType.DMA],
    )(x)


if __name__ == "__main__":
    key = jax.random.PRNGKey(0)
    x = jax.random.normal(key, (2, 4, 16, 16), dtype=jnp.float32)

    # Primary zero-copy (aliased) path.
    y = jax.block_until_ready(identity(x))
    assert y.shape == x.shape and y.dtype == x.dtype
    assert bool(jnp.all(y == x))

    # Materialized-copy (direct HBM->HBM DMA) path.
    y2 = jax.block_until_ready(identity_copy(x))
    assert y2.shape == x.shape and y2.dtype == x.dtype
    assert bool(jnp.all(y2 == x))

    print("KERNEL_OK")
</pallas_src>

<mosaic_0001>
module attributes {stable_mosaic.version = 11 : i64} {
  func.func @_identity_alias_kernel(%arg0: memref<2x4x16x16xf32, #tpu.memory_space<any>>, %arg1: memref<2x4x16x16xf32, #tpu.memory_space<any>>) attributes {dimension_semantics = [], scalar_prefetch = 0 : i64, scratch_operands = 0 : i64, tpu.core_type = #tpu.core_type<tc>} {
    return
  }
}

</mosaic_0001>

<bundles_post_ra>
// kernel: tpu_custom_call.1
= control target key start
LH: loop header
LB: loop body
LE: loop exit
PB: predicated region body
PF: predicated region fallthrough
CT: control target
= control target key end

     0   :  { %s16_s0 = inlined_call_operand.hbm [shape: f32[2,4,16,16], index: 0, kind: input, shape index: {}, may-alias: {0,1}]   ;;  %s17_s1 = inlined_call_operand.hbm [shape: f32[2,4,16,16], index: 1, kind: output, shape index: {}, may-alias: {0,1}]  }

</bundles_post_ra>
